<compile_context>
chip_gen: v5e
topology: v5e:2x2
jax: 0.10.0
libtpu: 0.0.40
codegen_flags: <defaults>
</compile_context>

<pallas_src>
import jax
import jax.numpy as jnp
from jax.experimental import pallas as pl
from jax.experimental.pallas import tpu as pltpu


def gcn_kernel(x_ref, w_ref, btile_ref, abig_ref, o_ref):
    """One (n, slab) grid step = S consecutive 128-lane sub-slabs of time*joints.

    x_ref     : (C_in, S*128)      input features for this slab (batch dim squeezed)
    w_ref     : (K, C_out, C_in)   f32 1x1-conv weight, split per adjacency kernel k
    btile_ref : (C_out, 128)       f32 pre-aggregated bias (sum_k b_k * colsum(A_k)), tiled
    abig_ref  : (K, 128, 128)      f32 kron(I_{128//V}, A[k]) -- same tile for every slab
    o_ref     : (C_out, S*128)     relu(gcn(x, A)) for this slab
    """
    k_num, sb, _ = abig_ref.shape          # sb = 128
    n_sub = x_ref.shape[1] // sb           # static sub-slab count

    w = w_ref[...].astype(jnp.float32)     # (K, C_out, C_in) -- hoisted, reused by all sub-slabs
    btile = btile_ref[...]                 # (C_out, 128)

    for s in range(n_sub):                 # static unrolled loop over 128-lane sub-slabs
        xs = x_ref[:, s * sb:(s + 1) * sb].astype(jnp.float32)          # (C_in, 128)
        acc = btile                                                      # register accumulator
        for k in range(k_num):             # static, small K
            xa = jnp.dot(xs, abig_ref[k], preferred_element_type=jnp.float32)   # (C_in, 128)
            acc = acc + jnp.dot(w[k], xa, preferred_element_type=jnp.float32)   # (C_out, 128)
        o_ref[:, s * sb:(s + 1) * sb] = jnp.maximum(acc, 0.0).astype(o_ref.dtype)


def gcn_forward(x, A, W, b, *, sub_block=128, target_subs=4):
    """x: (N, C_in, T, V); A: (K, V, V); W: (K*C_out, C_in) 1x1-conv weight; b: (K*C_out,)."""
    N, Cin, T, V = x.shape
    K = A.shape[0]
    Cout = W.shape[0] // K
    L_n = T * V                                   # lanes per batch element (pos = t*V + v)

    # TODO(synk): real ST-GCN graphs (V=18/25) need V padded to a divisor of 128.
    assert sub_block % V == 0, "V must divide 128"
    assert L_n % sub_block == 0, "T*V must be a multiple of 128"

    subs_total = L_n // sub_block
    S = min(target_subs, subs_total)              # 128-lane sub-slabs per grid step
    while subs_total % S:
        S -= 1
    lane_block = S * sub_block
    G = subs_total // S                           # slabs per batch element

    # Contiguous reshape only -- no HBM transpose on input or output.
    x_r = x.reshape(N, Cin, L_n)

    # Per-k weight split (clean sublane-contiguous slices in-kernel).
    w_split = W.reshape(K, Cout, Cin).astype(jnp.float32)

    # Pre-aggregated bias: b_agg[c, w] = sum_k b[k*Cout + c] * sum_v A[k, v, w], tiled per 128 lanes.
    col_a = jnp.sum(A.astype(jnp.float32), axis=1)                                   # (K, V)
    b_small = jnp.einsum('kc,kw->cw', b.reshape(K, Cout).astype(jnp.float32), col_a)  # (Cout, V)
    b_tile = jnp.tile(b_small, (1, sub_block // V))                                   # (Cout, 128)

    # Block-diagonal adjacency for ONE 128-lane sub-slab: kron(I_{128//V}, A[k]).
    # Fixed (K,128,128) f32 (192 KiB) reused by every grid step.
    groups = sub_block // V
    eye_g = jnp.eye(groups, dtype=jnp.float32)
    abig = jax.vmap(lambda Ak: jnp.kron(eye_g, Ak))(A.astype(jnp.float32))            # (K,128,128)

    out_flat = pl.pallas_call(
        gcn_kernel,
        out_shape=jax.ShapeDtypeStruct((N, Cout, L_n), x.dtype),
        grid_spec=pltpu.PrefetchScalarGridSpec(
            num_scalar_prefetch=0,
            grid=(N, G),
            in_specs=[
                pl.BlockSpec((None, Cin, lane_block), lambda n, j: (n, 0, j)),
                pl.BlockSpec((K, Cout, Cin), lambda n, j: (0, 0, 0)),
                pl.BlockSpec((Cout, sub_block), lambda n, j: (0, 0)),
                pl.BlockSpec((K, sub_block, sub_block), lambda n, j: (0, 0, 0)),
            ],
            out_specs=pl.BlockSpec((None, Cout, lane_block), lambda n, j: (n, 0, j)),
        ),
        compiler_params=pltpu.CompilerParams(
            dimension_semantics=("parallel", "parallel")),
    )(x_r, w_split, b_tile, abig)

    out = out_flat.reshape(N, Cout, T, V)         # contiguous, free
    return out, A


def ref_forward(x, A, W, b):
    """Pure-JAX f32 reference mirroring ConvTemporalGraphical + ReLU (NCHW)."""
    N, Cin, T, V = x.shape
    K = A.shape[0]
    Cout = W.shape[0] // K
    y = jnp.einsum('oc,nctv->notv', W, x) + b[None, :, None, None]
    y = y.reshape(N, K, Cout, T, V)
    out = jnp.einsum('nkctv,kvw->nctw', y, A)
    return jax.nn.relu(out)


if __name__ == "__main__":
    # ST-GCN-style small shapes: batch N=2, C_in=4, C_out=8, T=64, joints V=8, K=3
    N, Cin, Cout, T, V, K = 2, 4, 8, 64, 8, 3

    key = jax.random.PRNGKey(0)
    k1, k2, k3, k4 = jax.random.split(key, 4)
    x = jax.random.normal(k1, (N, Cin, T, V), dtype=jnp.float32)
    A = jax.random.normal(k2, (K, V, V), dtype=jnp.float32)
    # Conv2d(in_channels, out_channels*K, kernel_size=(1,1)) -> weight (K*Cout, Cin), bias (K*Cout,)
    W = jax.random.normal(k3, (K * Cout, Cin), dtype=jnp.float32) / jnp.sqrt(jnp.float32(Cin))
    b = 0.1 * jax.random.normal(k4, (K * Cout,), dtype=jnp.float32)

    out, A_out = gcn_forward(x, A, W, b)
    out = jax.block_until_ready(out)

    ref = ref_forward(x, A, W, b)
    assert out.shape == (N, Cout, T, V)
    max_err = float(jnp.max(jnp.abs(out - ref)))
    scale = float(jnp.max(jnp.abs(ref)))
    assert max_err <= 1e-2 * scale + 1e-3, f"mismatch vs JAX reference: {max_err} (scale {scale})"
    assert jnp.array_equal(A_out, A)
    print("KERNEL_OK")
</pallas_src>

<mosaic_0001>
module attributes {stable_mosaic.version = 11 : i64} {
  func.func @gcn_kernel(%arg0: i32, %arg1: i32, %arg2: memref<1x4x512xf32, #tpu.memory_space<vmem>>, %arg3: memref<3x8x4xf32, #tpu.memory_space<vmem>>, %arg4: memref<8x128xf32, #tpu.memory_space<vmem>>, %arg5: memref<3x128x128xf32, #tpu.memory_space<vmem>>, %arg6: memref<1x8x512xf32, #tpu.memory_space<vmem>>) attributes {dimension_semantics = [#tpu.dimension_semantics<parallel>, #tpu.dimension_semantics<parallel>], iteration_bounds = array<i64: 2, 1>, scalar_prefetch = 0 : i64, scratch_operands = 0 : i64, tpu.core_type = #tpu.core_type<tc>, window_params = [{transform_indices = @transform_0, window_bounds = array<i64: 1, 4, 512>}, {pipeline_mode = #tpu.pipeline_mode<synchronous>, transform_indices = @transform_1, window_bounds = array<i64: 3, 8, 4>}, {pipeline_mode = #tpu.pipeline_mode<synchronous>, transform_indices = @transform_2, window_bounds = array<i64: 8, 128>}, {pipeline_mode = #tpu.pipeline_mode<synchronous>, transform_indices = @transform_3, window_bounds = array<i64: 3, 128, 128>}, {transform_indices = @transform_4, window_bounds = array<i64: 1, 8, 512>}]} {
    %c0 = arith.constant 0 : index
    %c0_0 = arith.constant 0 : index
    %c0_1 = arith.constant 0 : index
    %0 = vector.load %arg3[%c0, %c0_0, %c0_1] : memref<3x8x4xf32, #tpu.memory_space<vmem>>, vector<3x8x4xf32>
    %c0_2 = arith.constant 0 : index
    %c0_3 = arith.constant 0 : index
    %1 = vector.load %arg4[%c0_2, %c0_3] : memref<8x128xf32, #tpu.memory_space<vmem>>, vector<8x128xf32>
    %c0_4 = arith.constant 0 : index
    %c0_5 = arith.constant 0 : index
    %c0_6 = arith.constant 0 : index
    %2 = vector.load %arg2[%c0_4, %c0_5, %c0_6] : memref<1x4x512xf32, #tpu.memory_space<vmem>>, vector<1x4x128xf32>
    %3 = vector.shape_cast %2 : vector<1x4x128xf32> to vector<4x128xf32>
    %c0_7 = arith.constant 0 : index
    %c0_8 = arith.constant 0 : index
    %c0_9 = arith.constant 0 : index
    %4 = vector.load %arg5[%c0_7, %c0_8, %c0_9] : memref<3x128x128xf32, #tpu.memory_space<vmem>>, vector<1x128x128xf32>
    %5 = vector.shape_cast %4 : vector<1x128x128xf32> to vector<128x128xf32>
    %cst = arith.constant dense<0.000000e+00> : vector<4x128xf32>
    %6 = tpu.matmul %3, %5, %cst {dimension_numbers = #tpu.dot_dimension_numbers<[1], [0], [0], [1], [0, 0, 1, 1], [], []>} : vector<4x128xf32>, vector<128x128xf32>, vector<4x128xf32> -> vector<4x128xf32>
    %7 = vector.extract_strided_slice %0 {offsets = [0, 0, 0], sizes = [1, 8, 4], strides = [1, 1, 1]} : vector<3x8x4xf32> to vector<1x8x4xf32>
    %8 = vector.shape_cast %7 : vector<1x8x4xf32> to vector<8x4xf32>
    %cst_10 = arith.constant dense<0.000000e+00> : vector<8x128xf32>
    %9 = tpu.matmul %8, %6, %cst_10 {dimension_numbers = #tpu.dot_dimension_numbers<[1], [0], [0], [1], [0, 0, 1, 1], [], []>} : vector<8x4xf32>, vector<4x128xf32>, vector<8x128xf32> -> vector<8x128xf32>
    %10 = arith.addf %1, %9 : vector<8x128xf32>
    %c1 = arith.constant 1 : index
    %c0_11 = arith.constant 0 : index
    %c0_12 = arith.constant 0 : index
    %11 = vector.load %arg5[%c1, %c0_11, %c0_12] : memref<3x128x128xf32, #tpu.memory_space<vmem>>, vector<1x128x128xf32>
    %12 = vector.shape_cast %11 : vector<1x128x128xf32> to vector<128x128xf32>
    %cst_13 = arith.constant dense<0.000000e+00> : vector<4x128xf32>
    %13 = tpu.matmul %3, %12, %cst_13 {dimension_numbers = #tpu.dot_dimension_numbers<[1], [0], [0], [1], [0, 0, 1, 1], [], []>} : vector<4x128xf32>, vector<128x128xf32>, vector<4x128xf32> -> vector<4x128xf32>
    %14 = vector.extract_strided_slice %0 {offsets = [1, 0, 0], sizes = [1, 8, 4], strides = [1, 1, 1]} : vector<3x8x4xf32> to vector<1x8x4xf32>
    %15 = vector.shape_cast %14 : vector<1x8x4xf32> to vector<8x4xf32>
    %cst_14 = arith.constant dense<0.000000e+00> : vector<8x128xf32>
    %16 = tpu.matmul %15, %13, %cst_14 {dimension_numbers = #tpu.dot_dimension_numbers<[1], [0], [0], [1], [0, 0, 1, 1], [], []>} : vector<8x4xf32>, vector<4x128xf32>, vector<8x128xf32> -> vector<8x128xf32>
    %17 = arith.addf %10, %16 : vector<8x128xf32>
    %c2 = arith.constant 2 : index
    %c0_15 = arith.constant 0 : index
    %c0_16 = arith.constant 0 : index
    %18 = vector.load %arg5[%c2, %c0_15, %c0_16] : memref<3x128x128xf32, #tpu.memory_space<vmem>>, vector<1x128x128xf32>
    %19 = vector.shape_cast %18 : vector<1x128x128xf32> to vector<128x128xf32>
    %cst_17 = arith.constant dense<0.000000e+00> : vector<4x128xf32>
    %20 = tpu.matmul %3, %19, %cst_17 {dimension_numbers = #tpu.dot_dimension_numbers<[1], [0], [0], [1], [0, 0, 1, 1], [], []>} : vector<4x128xf32>, vector<128x128xf32>, vector<4x128xf32> -> vector<4x128xf32>
    %21 = vector.extract_strided_slice %0 {offsets = [2, 0, 0], sizes = [1, 8, 4], strides = [1, 1, 1]} : vector<3x8x4xf32> to vector<1x8x4xf32>
    %22 = vector.shape_cast %21 : vector<1x8x4xf32> to vector<8x4xf32>
    %cst_18 = arith.constant dense<0.000000e+00> : vector<8x128xf32>
    %23 = tpu.matmul %22, %20, %cst_18 {dimension_numbers = #tpu.dot_dimension_numbers<[1], [0], [0], [1], [0, 0, 1, 1], [], []>} : vector<8x4xf32>, vector<4x128xf32>, vector<8x128xf32> -> vector<8x128xf32>
    %24 = arith.addf %17, %23 : vector<8x128xf32>
    %cst_19 = arith.constant 0.000000e+00 : f32
    %25 = vector.broadcast %cst_19 : f32 to vector<8x128xf32>
    %26 = arith.maximumf %24, %25 : vector<8x128xf32>
    %c0_20 = arith.constant 0 : index
    %c0_21 = arith.constant 0 : index
    %c0_22 = arith.constant 0 : index
    %27 = vector.load %arg6[%c0_20, %c0_21, %c0_22] : memref<1x8x512xf32, #tpu.memory_space<vmem>>, vector<1x8x128xf32>
    %28 = vector.shape_cast %27 : vector<1x8x128xf32> to vector<8x128xf32>
    %29 = vector.shape_cast %26 : vector<8x128xf32> to vector<1x8x128xf32>
    tpu.vector_store %arg6[%c0_20, %c0_21, %c0_22], %29 {strides = array<i32>} : memref<1x8x512xf32, #tpu.memory_space<vmem>>, vector<1x8x128xf32>,
    %c0_23 = arith.constant 0 : index
    %c0_24 = arith.constant 0 : index
    %c128 = arith.constant 128 : index
    %30 = vector.load %arg2[%c0_23, %c0_24, %c128] : memref<1x4x512xf32, #tpu.memory_space<vmem>>, vector<1x4x128xf32>
    %31 = vector.shape_cast %30 : vector<1x4x128xf32> to vector<4x128xf32>
    %c0_25 = arith.constant 0 : index
    %c0_26 = arith.constant 0 : index
    %c0_27 = arith.constant 0 : index
    %32 = vector.load %arg5[%c0_25, %c0_26, %c0_27] : memref<3x128x128xf32, #tpu.memory_space<vmem>>, vector<1x128x128xf32>
    %33 = vector.shape_cast %32 : vector<1x128x128xf32> to vector<128x128xf32>
    %cst_28 = arith.constant dense<0.000000e+00> : vector<4x128xf32>
    %34 = tpu.matmul %31, %33, %cst_28 {dimension_numbers = #tpu.dot_dimension_numbers<[1], [0], [0], [1], [0, 0, 1, 1], [], []>} : vector<4x128xf32>, vector<128x128xf32>, vector<4x128xf32> -> vector<4x128xf32>
    %35 = vector.extract_strided_slice %0 {offsets = [0, 0, 0], sizes = [1, 8, 4], strides = [1, 1, 1]} : vector<3x8x4xf32> to vector<1x8x4xf32>
    %36 = vector.shape_cast %35 : vector<1x8x4xf32> to vector<8x4xf32>
    %cst_29 = arith.constant dense<0.000000e+00> : vector<8x128xf32>
    %37 = tpu.matmul %36, %34, %cst_29 {dimension_numbers = #tpu.dot_dimension_numbers<[1], [0], [0], [1], [0, 0, 1, 1], [], []>} : vector<8x4xf32>, vector<4x128xf32>, vector<8x128xf32> -> vector<8x128xf32>
    %38 = arith.addf %1, %37 : vector<8x128xf32>
    %c1_30 = arith.constant 1 : index
    %c0_31 = arith.constant 0 : index
    %c0_32 = arith.constant 0 : index
    %39 = vector.load %arg5[%c1_30, %c0_31, %c0_32] : memref<3x128x128xf32, #tpu.memory_space<vmem>>, vector<1x128x128xf32>
    %40 = vector.shape_cast %39 : vector<1x128x128xf32> to vector<128x128xf32>
    %cst_33 = arith.constant dense<0.000000e+00> : vector<4x128xf32>
    %41 = tpu.matmul %31, %40, %cst_33 {dimension_numbers = #tpu.dot_dimension_numbers<[1], [0], [0], [1], [0, 0, 1, 1], [], []>} : vector<4x128xf32>, vector<128x128xf32>, vector<4x128xf32> -> vector<4x128xf32>
    %42 = vector.extract_strided_slice %0 {offsets = [1, 0, 0], sizes = [1, 8, 4], strides = [1, 1, 1]} : vector<3x8x4xf32> to vector<1x8x4xf32>
    %43 = vector.shape_cast %42 : vector<1x8x4xf32> to vector<8x4xf32>
    %cst_34 = arith.constant dense<0.000000e+00> : vector<8x128xf32>
    %44 = tpu.matmul %43, %41, %cst_34 {dimension_numbers = #tpu.dot_dimension_numbers<[1], [0], [0], [1], [0, 0, 1, 1], [], []>} : vector<8x4xf32>, vector<4x128xf32>, vector<8x128xf32> -> vector<8x128xf32>
    %45 = arith.addf %38, %44 : vector<8x128xf32>
    %c2_35 = arith.constant 2 : index
    %c0_36 = arith.constant 0 : index
    %c0_37 = arith.constant 0 : index
    %46 = vector.load %arg5[%c2_35, %c0_36, %c0_37] : memref<3x128x128xf32, #tpu.memory_space<vmem>>, vector<1x128x128xf32>
    %47 = vector.shape_cast %46 : vector<1x128x128xf32> to vector<128x128xf32>
    %cst_38 = arith.constant dense<0.000000e+00> : vector<4x128xf32>
    %48 = tpu.matmul %31, %47, %cst_38 {dimension_numbers = #tpu.dot_dimension_numbers<[1], [0], [0], [1], [0, 0, 1, 1], [], []>} : vector<4x128xf32>, vector<128x128xf32>, vector<4x128xf32> -> vector<4x128xf32>
    %49 = vector.extract_strided_slice %0 {offsets = [2, 0, 0], sizes = [1, 8, 4], strides = [1, 1, 1]} : vector<3x8x4xf32> to vector<1x8x4xf32>
    %50 = vector.shape_cast %49 : vector<1x8x4xf32> to vector<8x4xf32>
    %cst_39 = arith.constant dense<0.000000e+00> : vector<8x128xf32>
    %51 = tpu.matmul %50, %48, %cst_39 {dimension_numbers = #tpu.dot_dimension_numbers<[1], [0], [0], [1], [0, 0, 1, 1], [], []>} : vector<8x4xf32>, vector<4x128xf32>, vector<8x128xf32> -> vector<8x128xf32>
    %52 = arith.addf %45, %51 : vector<8x128xf32>
    %cst_40 = arith.constant 0.000000e+00 : f32
    %53 = vector.broadcast %cst_40 : f32 to vector<8x128xf32>
    %54 = arith.maximumf %52, %53 : vector<8x128xf32>
    %c0_41 = arith.constant 0 : index
    %c0_42 = arith.constant 0 : index
    %c128_43 = arith.constant 128 : index
    %55 = vector.load %arg6[%c0_41, %c0_42, %c128_43] : memref<1x8x512xf32, #tpu.memory_space<vmem>>, vector<1x8x128xf32>
    %56 = vector.shape_cast %55 : vector<1x8x128xf32> to vector<8x128xf32>
    %57 = vector.shape_cast %54 : vector<8x128xf32> to vector<1x8x128xf32>
    tpu.vector_store %arg6[%c0_41, %c0_42, %c128_43], %57 {strides = array<i32>} : memref<1x8x512xf32, #tpu.memory_space<vmem>>, vector<1x8x128xf32>,
    %c0_44 = arith.constant 0 : index
    %c0_45 = arith.constant 0 : index
    %c256 = arith.constant 256 : index
    %58 = vector.load %arg2[%c0_44, %c0_45, %c256] : memref<1x4x512xf32, #tpu.memory_space<vmem>>, vector<1x4x128xf32>
    %59 = vector.shape_cast %58 : vector<1x4x128xf32> to vector<4x128xf32>
    %c0_46 = arith.constant 0 : index
    %c0_47 = arith.constant 0 : index
    %c0_48 = arith.constant 0 : index
    %60 = vector.load %arg5[%c0_46, %c0_47, %c0_48] : memref<3x128x128xf32, #tpu.memory_space<vmem>>, vector<1x128x128xf32>
    %61 = vector.shape_cast %60 : vector<1x128x128xf32> to vector<128x128xf32>
    %cst_49 = arith.constant dense<0.000000e+00> : vector<4x128xf32>
    %62 = tpu.matmul %59, %61, %cst_49 {dimension_numbers = #tpu.dot_dimension_numbers<[1], [0], [0], [1], [0, 0, 1, 1], [], []>} : vector<4x128xf32>, vector<128x128xf32>, vector<4x128xf32> -> vector<4x128xf32>
    %63 = vector.extract_strided_slice %0 {offsets = [0, 0, 0], sizes = [1, 8, 4], strides = [1, 1, 1]} : vector<3x8x4xf32> to vector<1x8x4xf32>
    %64 = vector.shape_cast %63 : vector<1x8x4xf32> to vector<8x4xf32>
    %cst_50 = arith.constant dense<0.000000e+00> : vector<8x128xf32>
    %65 = tpu.matmul %64, %62, %cst_50 {dimension_numbers = #tpu.dot_dimension_numbers<[1], [0], [0], [1], [0, 0, 1, 1], [], []>} : vector<8x4xf32>, vector<4x128xf32>, vector<8x128xf32> -> vector<8x128xf32>
    %66 = arith.addf %1, %65 : vector<8x128xf32>
    %c1_51 = arith.constant 1 : index
    %c0_52 = arith.constant 0 : index
    %c0_53 = arith.constant 0 : index
    %67 = vector.load %arg5[%c1_51, %c0_52, %c0_53] : memref<3x128x128xf32, #tpu.memory_space<vmem>>, vector<1x128x128xf32>
    %68 = vector.shape_cast %67 : vector<1x128x128xf32> to vector<128x128xf32>
    %cst_54 = arith.constant dense<0.000000e+00> : vector<4x128xf32>
    %69 = tpu.matmul %59, %68, %cst_54 {dimension_numbers = #tpu.dot_dimension_numbers<[1], [0], [0], [1], [0, 0, 1, 1], [], []>} : vector<4x128xf32>, vector<128x128xf32>, vector<4x128xf32> -> vector<4x128xf32>
    %70 = vector.extract_strided_slice %0 {offsets = [1, 0, 0], sizes = [1, 8, 4], strides = [1, 1, 1]} : vector<3x8x4xf32> to vector<1x8x4xf32>
    %71 = vector.shape_cast %70 : vector<1x8x4xf32> to vector<8x4xf32>
    %cst_55 = arith.constant dense<0.000000e+00> : vector<8x128xf32>
    %72 = tpu.matmul %71, %69, %cst_55 {dimension_numbers = #tpu.dot_dimension_numbers<[1], [0], [0], [1], [0, 0, 1, 1], [], []>} : vector<8x4xf32>, vector<4x128xf32>, vector<8x128xf32> -> vector<8x128xf32>
    %73 = arith.addf %66, %72 : vector<8x128xf32>
    %c2_56 = arith.constant 2 : index
    %c0_57 = arith.constant 0 : index
    %c0_58 = arith.constant 0 : index
    %74 = vector.load %arg5[%c2_56, %c0_57, %c0_58] : memref<3x128x128xf32, #tpu.memory_space<vmem>>, vector<1x128x128xf32>
    %75 = vector.shape_cast %74 : vector<1x128x128xf32> to vector<128x128xf32>
    %cst_59 = arith.constant dense<0.000000e+00> : vector<4x128xf32>
    %76 = tpu.matmul %59, %75, %cst_59 {dimension_numbers = #tpu.dot_dimension_numbers<[1], [0], [0], [1], [0, 0, 1, 1], [], []>} : vector<4x128xf32>, vector<128x128xf32>, vector<4x128xf32> -> vector<4x128xf32>
    %77 = vector.extract_strided_slice %0 {offsets = [2, 0, 0], sizes = [1, 8, 4], strides = [1, 1, 1]} : vector<3x8x4xf32> to vector<1x8x4xf32>
    %78 = vector.shape_cast %77 : vector<1x8x4xf32> to vector<8x4xf32>
    %cst_60 = arith.constant dense<0.000000e+00> : vector<8x128xf32>
    %79 = tpu.matmul %78, %76, %cst_60 {dimension_numbers = #tpu.dot_dimension_numbers<[1], [0], [0], [1], [0, 0, 1, 1], [], []>} : vector<8x4xf32>, vector<4x128xf32>, vector<8x128xf32> -> vector<8x128xf32>
    %80 = arith.addf %73, %79 : vector<8x128xf32>
    %cst_61 = arith.constant 0.000000e+00 : f32
    %81 = vector.broadcast %cst_61 : f32 to vector<8x128xf32>
    %82 = arith.maximumf %80, %81 : vector<8x128xf32>
    %c0_62 = arith.constant 0 : index
    %c0_63 = arith.constant 0 : index
    %c256_64 = arith.constant 256 : index
    %83 = vector.load %arg6[%c0_62, %c0_63, %c256_64] : memref<1x8x512xf32, #tpu.memory_space<vmem>>, vector<1x8x128xf32>
    %84 = vector.shape_cast %83 : vector<1x8x128xf32> to vector<8x128xf32>
    %85 = vector.shape_cast %82 : vector<8x128xf32> to vector<1x8x128xf32>
    tpu.vector_store %arg6[%c0_62, %c0_63, %c256_64], %85 {strides = array<i32>} : memref<1x8x512xf32, #tpu.memory_space<vmem>>, vector<1x8x128xf32>,
    %c0_65 = arith.constant 0 : index
    %c0_66 = arith.constant 0 : index
    %c384 = arith.constant 384 : index
    %86 = vector.load %arg2[%c0_65, %c0_66, %c384] : memref<1x4x512xf32, #tpu.memory_space<vmem>>, vector<1x4x128xf32>
    %87 = vector.shape_cast %86 : vector<1x4x128xf32> to vector<4x128xf32>
    %c0_67 = arith.constant 0 : index
    %c0_68 = arith.constant 0 : index
    %c0_69 = arith.constant 0 : index
    %88 = vector.load %arg5[%c0_67, %c0_68, %c0_69] : memref<3x128x128xf32, #tpu.memory_space<vmem>>, vector<1x128x128xf32>
    %89 = vector.shape_cast %88 : vector<1x128x128xf32> to vector<128x128xf32>
    %cst_70 = arith.constant dense<0.000000e+00> : vector<4x128xf32>
    %90 = tpu.matmul %87, %89, %cst_70 {dimension_numbers = #tpu.dot_dimension_numbers<[1], [0], [0], [1], [0, 0, 1, 1], [], []>} : vector<4x128xf32>, vector<128x128xf32>, vector<4x128xf32> -> vector<4x128xf32>
    %91 = vector.extract_strided_slice %0 {offsets = [0, 0, 0], sizes = [1, 8, 4], strides = [1, 1, 1]} : vector<3x8x4xf32> to vector<1x8x4xf32>
    %92 = vector.shape_cast %91 : vector<1x8x4xf32> to vector<8x4xf32>
    %cst_71 = arith.constant dense<0.000000e+00> : vector<8x128xf32>
    %93 = tpu.matmul %92, %90, %cst_71 {dimension_numbers = #tpu.dot_dimension_numbers<[1], [0], [0], [1], [0, 0, 1, 1], [], []>} : vector<8x4xf32>, vector<4x128xf32>, vector<8x128xf32> -> vector<8x128xf32>
    %94 = arith.addf %1, %93 : vector<8x128xf32>
    %c1_72 = arith.constant 1 : index
    %c0_73 = arith.constant 0 : index
    %c0_74 = arith.constant 0 : index
    %95 = vector.load %arg5[%c1_72, %c0_73, %c0_74] : memref<3x128x128xf32, #tpu.memory_space<vmem>>, vector<1x128x128xf32>
    %96 = vector.shape_cast %95 : vector<1x128x128xf32> to vector<128x128xf32>
    %cst_75 = arith.constant dense<0.000000e+00> : vector<4x128xf32>
    %97 = tpu.matmul %87, %96, %cst_75 {dimension_numbers = #tpu.dot_dimension_numbers<[1], [0], [0], [1], [0, 0, 1, 1], [], []>} : vector<4x128xf32>, vector<128x128xf32>, vector<4x128xf32> -> vector<4x128xf32>
    %98 = vector.extract_strided_slice %0 {offsets = [1, 0, 0], sizes = [1, 8, 4], strides = [1, 1, 1]} : vector<3x8x4xf32> to vector<1x8x4xf32>
    %99 = vector.shape_cast %98 : vector<1x8x4xf32> to vector<8x4xf32>
    %cst_76 = arith.constant dense<0.000000e+00> : vector<8x128xf32>
    %100 = tpu.matmul %99, %97, %cst_76 {dimension_numbers = #tpu.dot_dimension_numbers<[1], [0], [0], [1], [0, 0, 1, 1], [], []>} : vector<8x4xf32>, vector<4x128xf32>, vector<8x128xf32> -> vector<8x128xf32>
    %101 = arith.addf %94, %100 : vector<8x128xf32>
    %c2_77 = arith.constant 2 : index
    %c0_78 = arith.constant 0 : index
    %c0_79 = arith.constant 0 : index
    %102 = vector.load %arg5[%c2_77, %c0_78, %c0_79] : memref<3x128x128xf32, #tpu.memory_space<vmem>>, vector<1x128x128xf32>
    %103 = vector.shape_cast %102 : vector<1x128x128xf32> to vector<128x128xf32>
    %cst_80 = arith.constant dense<0.000000e+00> : vector<4x128xf32>
    %104 = tpu.matmul %87, %103, %cst_80 {dimension_numbers = #tpu.dot_dimension_numbers<[1], [0], [0], [1], [0, 0, 1, 1], [], []>} : vector<4x128xf32>, vector<128x128xf32>, vector<4x128xf32> -> vector<4x128xf32>
    %105 = vector.extract_strided_slice %0 {offsets = [2, 0, 0], sizes = [1, 8, 4], strides = [1, 1, 1]} : vector<3x8x4xf32> to vector<1x8x4xf32>
    %106 = vector.shape_cast %105 : vector<1x8x4xf32> to vector<8x4xf32>
    %cst_81 = arith.constant dense<0.000000e+00> : vector<8x128xf32>
    %107 = tpu.matmul %106, %104, %cst_81 {dimension_numbers = #tpu.dot_dimension_numbers<[1], [0], [0], [1], [0, 0, 1, 1], [], []>} : vector<8x4xf32>, vector<4x128xf32>, vector<8x128xf32> -> vector<8x128xf32>
    %108 = arith.addf %101, %107 : vector<8x128xf32>
    %cst_82 = arith.constant 0.000000e+00 : f32
    %109 = vector.broadcast %cst_82 : f32 to vector<8x128xf32>
    %110 = arith.maximumf %108, %109 : vector<8x128xf32>
    %c0_83 = arith.constant 0 : index
    %c0_84 = arith.constant 0 : index
    %c384_85 = arith.constant 384 : index
    %111 = vector.load %arg6[%c0_83, %c0_84, %c384_85] : memref<1x8x512xf32, #tpu.memory_space<vmem>>, vector<1x8x128xf32>
    %112 = vector.shape_cast %111 : vector<1x8x128xf32> to vector<8x128xf32>
    %113 = vector.shape_cast %110 : vector<8x128xf32> to vector<1x8x128xf32>
    tpu.vector_store %arg6[%c0_83, %c0_84, %c384_85], %113 {strides = array<i32>} : memref<1x8x512xf32, #tpu.memory_space<vmem>>, vector<1x8x128xf32>,
    return
  }
  func.func @transform_0(%arg0: i32, %arg1: i32) -> (i32, i32, i32) {
    %c0_i32 = arith.constant 0 : i32
    %c0_i32_0 = arith.constant 0 : i32
    return %arg0, %c0_i32, %arg1 : i32, i32, i32
  }
  func.func @transform_1(%arg0: i32, %arg1: i32) -> (i32, i32, i32) {
    %c0_i32 = arith.constant 0 : i32
    %c0_i32_0 = arith.constant 0 : i32
    %c0_i32_1 = arith.constant 0 : i32
    %c0_i32_2 = arith.constant 0 : i32
    return %c0_i32, %c0_i32_0, %c0_i32_1 : i32, i32, i32
  }
  func.func @transform_2(%arg0: i32, %arg1: i32) -> (i32, i32) {
    %c0_i32 = arith.constant 0 : i32
    %c0_i32_0 = arith.constant 0 : i32
    %c0_i32_1 = arith.constant 0 : i32
    return %c0_i32, %c0_i32_0 : i32, i32
  }
  func.func @transform_3(%arg0: i32, %arg1: i32) -> (i32, i32, i32) {
    %c0_i32 = arith.constant 0 : i32
    %c0_i32_0 = arith.constant 0 : i32
    %c0_i32_1 = arith.constant 0 : i32
    %c0_i32_2 = arith.constant 0 : i32
    return %c0_i32, %c0_i32_0, %c0_i32_1 : i32, i32, i32
  }
  func.func @transform_4(%arg0: i32, %arg1: i32) -> (i32, i32, i32) {
    %c0_i32 = arith.constant 0 : i32
    %c0_i32_0 = arith.constant 0 : i32
    return %arg0, %c0_i32, %arg1 : i32, i32, i32
  }
}

</mosaic_0001>

<bundles_post_ra>
// kernel: tpu_custom_call.1
= control target key start
LH: loop header
LB: loop body
LE: loop exit
PB: predicated region body
PF: predicated region fallthrough
CT: control target
= control target key end

     0   :  { %9 = vsyncpa [#allocation3], 0  ;;  %s1925_s0 = inlined_call_operand.vmem [shape: f32[2,4,512], index: 0, kind: input, shape index: {}]   ;;  %s1926_s1 = inlined_call_operand.vmem [shape: f32[3,8,4], index: 1, kind: input, shape index: {}]   ;;  %s1927_s2 = inlined_call_operand.hbm [shape: f32[8,128], index: 2, kind: input, shape index: {}]   ;;  %s1928_s3 = inlined_call_operand.hbm [shape: f32[3,128,128], index: 3, kind: input, shape index: {}]   ;;  %s1929_s4 = inlined_call_operand.hbm [shape: f32[2,8,512], index: 4, kind: output, shape index: {}]  }
   0x1   :  { %10 = vsyncpa [#allocation6], 0 }
   0x2   :  { %11 = vsyncpa [#allocation4], 0 }
   0x3   :  { %13 = vsyncpa [#allocation4 + $0x1], 0  ;;  %s1423_s15 = smov 0   ;;  %s1425_s16 = smov 0  }
   0x4   :  { %s1427_s17 = smov 0   ;;  %s1429_s18 = smov 0  }
   0x5   :  { %s1431_s19 = smov 0   ;;  %s1433_s20 = smov 0  }
   0x6 LB: > { %s1125_s21 = sadd.s32 4294967295, %s1392_s20   ;;  %s1126_s22 = sadd.s32 4294967294, %s1392_s20   ;;  %s1392_s20 = sphi %s1433_s20, %s19_s20   ;;  %s1388_s19 = sphi %s1431_s19, %s1938_s19   ;;  %s1384_s18 = sphi %s1429_s18, %s1937_s18   ;;  %s1380_s17 = sphi %s1427_s17, %s1936_s17   ;;  %s1376_s16 = sphi %s1425_s16, %s1935_s16   ;;  %s1372_s15 = sphi %s1423_s15, %s1934_s15  }
   0x7   : > { %s31_s23 = sadd.s32 1, %s1388_s19  ;;  %s131_s24 = sadd.s32 1, %s1380_s17 }
   0x8   : > { %p33_p0 = scmp.ge.s32.totalorder %s31_s23, 2  ;;  %p141_p1 = scmp.ne.s32.totalorder %s1380_s17, %s1376_s16 }
   0x9   : > { %p142_p2 = scmp.eq.s32.totalorder %s1125_s21, 1  ;;  %p147_p3 = scmp.ne.s32.totalorder %s1376_s16, %s1372_s15 }
   0xa   : > { %s1940_s23 = smov (%p33_p0, %s31_s23), 0  ;;  %p148_p5 = scmp.eq.s32.totalorder %s1126_s22, 1 }
   0xb   : > { %p1463_p4 = por %p142_p2, %p141_p1  ;;  %s126_s26 = ssub.s32 %s1388_s19, %s1940_s23 }
   0xc   : > { %p1127_p6 = scmp.ge.s32.totalorder %s1392_s20, 1  ;;  %p129_p7 = scmp.eq.s32.totalorder %s126_s26, 0 }
   0xd   : > { %p1470_p8 = por %p148_p5, %p147_p3  ;;  %p155_p9 = scmp.lt.s32.totalorder %s1392_s20, 3 }
   0xe   : > { %s1476_s28 = scalar_select %p129_p7, %s1380_s17, %s131_s24  }
   0xf   : > { %p1478_p10 = pnand %p1127_p6, %p155_p9  ;;  %p1482_p11 = scmp.eq.s32.totalorder %s1125_s21, 0 }
  0x10   : > { %s170_s7 = sshll.u32 %s1927_s2, 4  ;;  %s1394_s8 = smov [#allocation2]   ;;  %s171_s7 = int_to_ptr.hbm [resolvable:$true] %s170_s7 }
  0x11   : > { %p1178_p12 = pneg %p1478_p10  ;;  %s172_s9 = sshll.u32 %s1394_s8, 4  ;;  %s173_s9 = int_to_ptr.vmem [resolvable:$true] %s172_s9 }
  0x12   : > { %s181_s12 = sshll.u32 %s1928_s3, 4  ;;  %s1395_s13 = smov [#allocation5]   ;;  %s182_s12 = int_to_ptr.hbm [resolvable:$true] %s181_s12 }
  0x13   : > { %p1179_p13 = pnand %p1482_p11, %p1178_p12  ;;  %s183_s14 = sshll.u32 %s1395_s13, 4  ;;  %s184_s14 = int_to_ptr.vmem [resolvable:$true] %s183_s14 }
  0x14   : > { %s1396_s21 = smov 128   ;;  %s1397_s22 = smov 8  }
  0x15   : > { %1181 = dma.hbm_to_vmem [thread:$0]  (!%p1179_p13), %s171_s7, 128, %s173_s9, [#allocation3]  }
  0x16   : > { %1184 = dma.hbm_to_vmem [thread:$0]  (!%p1179_p13), %s182_s12, 6144, %s184_s14, [#allocation6], %s1396_s21, %s1396_s21, %s1397_s22  }
  0x17   : > { %212 = sbr.rel (%p1478_p10) target bundleno = 1148 (0x47c), region = 36 }
  0x1c   : > { %1359 = dma.done.wait (%p1482_p11), [#allocation3], 128  }
  0x1d   : > { %1361 = vsyncadd (%p1482_p11), [#allocation3], 4294967168 }
  0x1e   : > { %1363 = dma.done.wait (%p1482_p11), [#allocation6], 6144  }
  0x1f   : > { %1365 = vsyncadd (%p1482_p11), [#allocation6], 4294961152  ;;  %v1506_v0 = vld [vmem:[#allocation5 + $0xf8] sm:$0xff]  ;;  %v1508_v1 = vld [vmem:[#allocation5 + $0xf0] sm:$0xff]  ;;  %p249_p0 = scmp.lt.s32.totalorder %s1384_s18, 1  ;;  %vm304_vm0 = vcmask 1043456  }
  0x20   : > { %346 = vmatpush.msra.mxu2 %v1506_v0  ;;  %v1511_v2 = vld [vmem:[#allocation5 + $0x178] sm:$0xff]  ;;  %v1513_v3 = vld [vmem:[#allocation5 + $0xe8] sm:$0xff]  ;;  %v1516_v4 = vld [vmem:[#allocation5 + $0x170] sm:$0xff]  ;;  %vm300_vm1 = vcmask 31744   ;;  %s245_s12 = sand.u32 1, %s1376_s16   ;;  %s1167_s21 = sshll.u32 %s1384_s18, 5 }
  0x21   : > { %410 = vmatpush.msra.mxu1 %v1511_v2  ;;  %v1518_v5 = vld [vmem:[#allocation5 + $0x78] sm:$0xff]  ;;  %v1522_v6 = vld [vmem:[#allocation5 + $0x168] sm:$0xff]  ;;  %v1524_v7 = vld [vmem:[#allocation5 + $0x70] sm:$0xff]  ;;  %s250_s24 = scalar_select %p249_p0, %s1384_s18, 1 }
  0x22   : > { %347 = vmatpush.msra.mxu2 %v1508_v1  ;;  %280 = vmatpush.msra.mxu0 %v1518_v5  ;;  %v1526_v8 = vld [vmem:[#allocation5 + $0xe0] sm:$0xff]  ;;  %v1529_v9 = vld [vmem:[#allocation5 + $0x68] sm:$0xff]  ;;  %v1535_v11 = vld [vmem:[#allocation5 + $0xd8] sm:$0xff]  ;;  %s1134_s13 = sshll.u32 %s245_s12, 5  ;;  %s1326_s9 = scalar_lea.hbm %s1929_s4, 64 }
  0x23   : > { %411 = vmatpush.msra.mxu1 %v1516_v4  ;;  %v1533_v10 = vld [vmem:[#allocation5 + $0x160] sm:$0xff]  ;;  %v1542_v13 = vld [vmem:[#allocation5 + $0x158] sm:$0xff]  ;;  %v1544_v14 = vld [vmem:[#allocation5 + $0xd0] sm:$0xff]  ;;  %s1166_s26 = sshll.u32 %s250_s24, 4  ;;  %s1736_s14 = scalar_lea.vmem [#allocation7], %s1134_s13 }
  0x24   : > { %348 = vmatpush.msra.mxu2 %v1513_v3  ;;  %281 = vmatpush.msra.mxu0 %v1524_v7  ;;  %v1538_v12 = vld [vmem:[#allocation5 + $0x60] sm:$0xff]  ;;  %v1547_v15 = vld [vmem:[#allocation5 + $0x58] sm:$0xff]  ;;  %v1551_v16 = vld [vmem:[#allocation5 + $0x150] sm:$0xff]  ;;  %s1632_s5 = scalar_lea.vmem %s1925_s0, %s1166_s26  ;;  %s1022_s26 = scalar_lea.hbm %s1929_s4, %s1167_s21 }
  0x25   : > { %412 = vmatpush.msra.mxu1 %v1522_v6  ;;  %v1553_v17 = vld [vmem:[#allocation5 + $0xc8] sm:$0xff]  ;;  %v1556_v18 = vld [vmem:[#allocation5 + $0x50] sm:$0xff]  ;;  %v1562_v20 = vld [vmem:[#allocation5 + $0xc0] sm:$0xff]  ;;  %s1024_s29 = sshll.u32 %s1736_s14, 4  ;;  %s1026_s30 = sshll.u32 %s1022_s26, 4  ;;  %s1025_s29 = int_to_ptr.vmem [resolvable:$true] %s1024_s29  ;;  %s1027_s30 = int_to_ptr.hbm [resolvable:$true] %s1026_s30 }
  0x26   : > { %349 = vmatpush.msra.mxu2 %v1526_v8  ;;  %282 = vmatpush.msra.mxu0 %v1529_v9  ;;  %v1560_v19 = vld [vmem:[#allocation5 + $0x148] sm:$0xff]  ;;  %v1569_v22 = vld [vmem:[#allocation5 + $0x140] sm:$0xff]  ;;  %v1571_v23 = vld [vmem:[#allocation5 + $0xb8] sm:$0xff]  ;;  %s1320_s6 = sshra.s32 %s1027_s30, 4  ;;  %s1321_s6 = int_to_ptr.hbm [resolvable:$true] %s1320_s6 }
  0x27   : > { %413 = vmatpush.msra.mxu1 %v1533_v10  ;;  %v1565_v21 = vld [vmem:[#allocation5 + $0x48] sm:$0xff]  ;;  %v1574_v24 = vld [vmem:[#allocation5 + $0x40] sm:$0xff]  ;;  %v1578_v25 = vld [vmem:[#allocation5 + $0x138] sm:$0xff]  ;;  %s1322_s7 = scalar_lea.hbm %s1321_s6, 32  ;;  %p1327_p5 = scmp.lt.s32.totalorder %s1321_s6, %s1929_s4 }
  0x28   : > { %350 = vmatpush.msra.mxu2 %v1535_v11  ;;  %283 = vmatpush.msra.mxu0 %v1538_v12  ;;  %v1581_v26 = vld [vmem:[#allocation5 + $0xb0] sm:$0xff]  ;;  %v1584_v27 = vld [vmem:[#allocation5 + $0x38] sm:$0xff]  ;;  %v1590_v29 = vld [vmem:[#allocation5 + $0xa8] sm:$0xff]  ;;  %p1323_p1 = scmp.ne.s32.totalorder %s1321_s6, %s1322_s7  ;;  %p1328_p6 = scmp.lt.s32.totalorder %s1326_s9, %s1322_s7 }
  0x29   : > { %414 = vmatpush.msra.mxu1 %v1542_v13  ;;  %v1588_v28 = vld [vmem:[#allocation5 + $0x130] sm:$0xff]  ;;  %v1597_v31 = vld [vmem:[#allocation5 + $0x128] sm:$0xff]  ;;  %v1600_v32 = vld [vmem:[#allocation5 + $0xa0] sm:$0xff] }
  0x2a   : > { %351 = vmatpush.msra.mxu2 %v1544_v14  ;;  %284 = vmatpush.msra.mxu0 %v1547_v15  ;;  %v1593_v30 = vld [vmem:[#allocation5 + $0x30] sm:$0xff]  ;;  %v1603_v33 = vld [vmem:[#allocation5 + $0x28] sm:$0xff]  ;;  %v1607_v34 = vld [vmem:[#allocation5 + $0x120] sm:$0xff]  ;;  %p1324_p2 = pnand %p1323_p1, %p1463_p4  ;;  %p1329_p7 = por %p1328_p6, %p1327_p5 }
  0x2b   : > { %415 = vmatpush.msra.mxu1 %v1551_v16  ;;  %v1609_v35 = vld [vmem:[#allocation5 + $0x98] sm:$0xff]  ;;  %v1612_v36 = vld [vmem:[#allocation5 + $0x20] sm:$0xff]  ;;  %v1618_v38 = vld [vmem:[#allocation5 + $0x90] sm:$0xff] }
  0x2c   : > { %352 = vmatpush.msra.mxu2 %v1553_v17  ;;  %285 = vmatpush.msra.mxu0 %v1556_v18  ;;  %v1616_v37 = vld [vmem:[#allocation5 + $0x118] sm:$0xff]  ;;  %v1625_v40 = vld [vmem:[#allocation5 + $0x110] sm:$0xff]  ;;  %v1627_v41 = vld [vmem:[#allocation5 + $0x88] sm:$0xff]  ;;  %p1325_p3 = pneg %p1324_p2 }
  0x2d   : > { %416 = vmatpush.msra.mxu1 %v1560_v19  ;;  %v1621_v39 = vld [vmem:[#allocation5 + $0x18] sm:$0xff]  ;;  %v1635_v42 = vld [vmem:[#allocation5 + $0x10] sm:$0xff]  ;;  %v1639_v43 = vld [vmem:[#allocation5 + $0x108] sm:$0xff] }
  0x2e   : > { %353 = vmatpush.msra.mxu2 %v1562_v20  ;;  %286 = vmatpush.msra.mxu0 %v1565_v21  ;;  %v1641_v44 = vld [vmem:[#allocation5 + $0x80] sm:$0xff]  ;;  %v1644_v45 = vld [vmem:[#allocation5 + $0x8] sm:$0xff]  ;;  %v263_v46 = vld [vmem:[%s1632_s5] sm:$0xf]  ;;  %p1330_p9 = pnand %p1329_p7, %p1325_p3 }
  0x2f   : > { %417 = vmatpush.msra.mxu1 %v1569_v22  ;;  %v1649_v47 = vld [vmem:[#allocation5 + $0x100] sm:$0xff]  ;;  %v1677_v49 = vld [vmem:[%s1926_s1] sm:$0xff]  ;;  %v1701_v55 = vld [vmem:[%s1926_s1 + $0x10] sm:$0xff] }
  0x30   : > { %354 = vmatpush.msra.mxu2 %v1571_v23  ;;  %287 = vmatpush.msra.mxu0 %v1574_v24  ;;  %v1652_v48 = vld [vmem:[#allocation5] sm:$0xff]  ;;  %v1681_v51 = vld [vmem:[%s1632_s5 + $0x4] sm:$0xf] }
  0x31   : > { %418 = vmatpush.msra.mxu1 %v1578_v25  ;;  %v1689_v52 = vld [vmem:[%s1926_s1 + $0x8] sm:$0xff]  ;;  %v1724_v58 = vld [vmem:[#allocation2] sm:$0xff] }
  0x32   : > { %355 = vmatpush.msra.mxu2 %v1581_v26  ;;  %288 = vmatpush.msra.mxu0 %v1584_v27 }
  0x33   : > { %419 = vmatpush.msra.mxu1 %v1588_v28 }
  0x34   : > { %356 = vmatpush.msra.mxu2 %v1590_v29  ;;  %289 = vmatpush.msra.mxu0 %v1593_v30 }
  0x35   : > { %420 = vmatpush.msra.mxu1 %v1597_v31 }
  0x36   : > { %357 = vmatpush.msra.mxu2 %v1600_v32  ;;  %290 = vmatpush.msra.mxu0 %v1603_v33 }
  0x37   : > { %421 = vmatpush.msra.mxu1 %v1607_v34 }
  0x38   : > { %358 = vmatpush.msra.mxu2 %v1609_v35  ;;  %291 = vmatpush.msra.mxu0 %v1612_v36 }
  0x39   : > { %422 = vmatpush.msra.mxu1 %v1616_v37 }
  0x3a   : > { %359 = vmatpush.msra.mxu2 %v1618_v38  ;;  %292 = vmatpush.msra.mxu0 %v1621_v39 }
  0x3b   : > { %423 = vmatpush.msra.mxu1 %v1625_v40 }
  0x3c   : > { %360 = vmatpush.msra.mxu2 %v1627_v41  ;;  %293 = vmatpush.msra.mxu0 %v1635_v42 }
  0x3d   : > { %424 = vmatpush.msra.mxu1 %v1639_v43 }
  0x3e   : > { %361 = vmatpush.msra.mxu2 %v1641_v44  ;;  %294 = vmatpush.msra.mxu0 %v1644_v45 }
  0x3f   : > { %362 = vmatmul.f32.vlgmr.msra.gmra.mxu2 %v263_v46  ;;  %425 = vmatpush.msra.mxu1 %v1649_v47 }
  0x40   : > { %426 = vmatmul.f32.vlgmr.msra.gmra.mxu1 %v263_v46  ;;  %295 = vmatpush.msra.mxu0 %v1652_v48 }
  0x41   : > { %296 = vmatmul.f32.vlgmr.msra.gmra.mxu0 %v263_v46  ;;  %536 = vmatpush.msrb.mxu2 %v1506_v0 }
  0x43   : > { %537 = vmatpush.msrb.mxu2 %v1508_v1 }
  0x45   : > { %538 = vmatpush.msrb.mxu2 %v1513_v3 }
  0x47   : > { %539 = vmatpush.msrb.mxu2 %v1526_v8 }
  0x49   : > { %540 = vmatpush.msrb.mxu2 %v1535_v11 }
  0x4b   : > { %541 = vmatpush.msrb.mxu2 %v1544_v14 }
  0x4d   : > { %542 = vmatpush.msrb.mxu2 %v1553_v17 }
  0x4f   : > { %543 = vmatpush.msrb.mxu2 %v1562_v20 }
  0x51   : > { %544 = vmatpush.msrb.mxu2 %v1571_v23 }
  0x53   : > { %545 = vmatpush.msrb.mxu2 %v1581_v26 }
  0x55   : > { %546 = vmatpush.msrb.mxu2 %v1590_v29 }
  0x57   : > { %547 = vmatpush.msrb.mxu2 %v1600_v32 }
  0x59   : > { %548 = vmatpush.msrb.mxu2 %v1609_v35 }
  0x5b   : > { %549 = vmatpush.msrb.mxu2 %v1618_v38 }
  0x5d   : > { %550 = vmatpush.msrb.mxu2 %v1627_v41 }
  0x5f   : > { %551 = vmatpush.msrb.mxu2 %v1641_v44 }
  0x60   : > { %552 = vmatmul.f32.vlgmr.msrb.gmra.mxu2 %v1681_v51 }
  0xbd   : > { %v427_v54 = vpop.f32.mrf.mxu1 }
  0xbe   : > { %v297_v50 = vpop.f32.mrf.mxu0 }
  0xbf   : > { %1137 = vmatpush.msk.msrb.mxu0 %vm304_vm0, %v297_v50  ;;  %v1748_v50 = vld [vmem:[%s1632_s5 + $0x8] sm:$0xf] }
  0xc0   : > { %1138 = vmatmul.msk.f32.vlgmr.msrb.gmra.mxu0 %vm300_vm1, %v1677_v49 }
  0xc2   : > { %v363_v53 = vpop.f32.mrf.mxu2 }
  0xc3   : > { %1139 = vmatpush.msk.msra.mxu3 %vm304_vm0, %v363_v53 }
  0xc4   : > { %1140 = vmatmul.msk.f32.vlgmr.msra.gmra.mxu3 %vm300_vm1, %v1689_v52 }
  0xc5   : > { %1141 = vmatpush.msk.msrb.mxu3 %vm304_vm0, %v427_v54 }
  0xc7   : > { %476 = vmatpush.msra.mxu3 %v1518_v5 }
  0xc9   : > { %477 = vmatpush.msra.mxu3 %v1524_v7 }
  0xcb   : > { %478 = vmatpush.msra.mxu3 %v1529_v9 }
  0xcc   : > { %1142 = vmatmul.msk.f32.vlgmr.msrb.gmra.mxu3 %vm300_vm1, %v1701_v55 }
  0xcd   : > { %479 = vmatpush.msra.mxu3 %v1538_v12 }
  0xcf   : > { %480 = vmatpush.msra.mxu3 %v1547_v15 }
  0xd1   : > { %481 = vmatpush.msra.mxu3 %v1556_v18 }
  0xd3   : > { %482 = vmatpush.msra.mxu3 %v1565_v21 }
  0xd5   : > { %483 = vmatpush.msra.mxu3 %v1574_v24 }
  0xd7   : > { %484 = vmatpush.msra.mxu3 %v1584_v27 }
  0xd9   : > { %485 = vmatpush.msra.mxu3 %v1593_v30 }
  0xdb   : > { %486 = vmatpush.msra.mxu3 %v1603_v33 }
  0xdd   : > { %487 = vmatpush.msra.mxu3 %v1612_v36 }
  0xdf   : > { %488 = vmatpush.msra.mxu3 %v1621_v39 }
  0xe1   : > { %489 = vmatpush.msra.mxu3 %v1635_v42 }
  0xe3   : > { %490 = vmatpush.msra.mxu3 %v1644_v45  ;;  %v553_v56 = vpop.f32.mrf.mxu2 }
  0xe5   : > { %491 = vmatpush.msra.mxu3 %v1652_v48 }
  0xe6   : > { %492 = vmatmul.f32.vlgmr.msra.gmra.mxu3 %v1681_v51 }
  0xe7   : > { %1145 = vmatpush.msk.msrb.mxu3 %vm304_vm0, %v553_v56 }
  0xe9   : > { %659 = vmatpush.msra.mxu3 %v1518_v5 }
  0xeb   : > { %660 = vmatpush.msra.mxu3 %v1524_v7 }
  0xed   : > { %661 = vmatpush.msra.mxu3 %v1529_v9 }
  0xee   : > { %1146 = vmatmul.msk.f32.vlgmr.msrb.gmra.mxu3 %vm300_vm1, %v1689_v52 }
  0xef   : > { %662 = vmatpush.msra.mxu3 %v1538_v12 }
  0xf1   : > { %663 = vmatpush.msra.mxu3 %v1547_v15 }
  0xf3   : > { %664 = vmatpush.msra.mxu3 %v1556_v18 }
  0xf5   : > { %665 = vmatpush.msra.mxu3 %v1565_v21 }
  0xf7   : > { %666 = vmatpush.msra.mxu3 %v1574_v24 }
  0xf9   : > { %667 = vmatpush.msra.mxu3 %v1584_v27 }
  0xfb   : > { %668 = vmatpush.msra.mxu3 %v1593_v30 }
  0xfd   : > { %669 = vmatpush.msra.mxu3 %v1603_v33 }
  0xff   : > { %670 = vmatpush.msra.mxu3 %v1612_v36 }
 0x101   : > { %671 = vmatpush.msra.mxu3 %v1621_v39 }
 0x103   : > { %672 = vmatpush.msra.mxu3 %v1635_v42 }
 0x105   : > { %673 = vmatpush.msra.mxu3 %v1644_v45 }
 0x107   : > { %674 = vmatpush.msra.mxu3 %v1652_v48 }
 0x108   : > { %675 = vmatmul.f32.vlgmr.msra.gmra.mxu3 %v1748_v50 }
 0x109   : > { %842 = vmatpush.msrb.mxu3 %v1518_v5 }
 0x10b   : > { %843 = vmatpush.msrb.mxu3 %v1524_v7 }
 0x10d   : > { %844 = vmatpush.msrb.mxu3 %v1529_v9 }
 0x10f   : > { %845 = vmatpush.msrb.mxu3 %v1538_v12 }
 0x111   : > { %846 = vmatpush.msrb.mxu3 %v1547_v15 }
 0x113   : > { %847 = vmatpush.msrb.mxu3 %v1556_v18 }
 0x115   : > { %848 = vmatpush.msrb.mxu3 %v1565_v21  ;;  %v1810_v21 = vld [vmem:[%s1632_s5 + $0xc] sm:$0xf]  ;;  %s1009_s5 = scalar_lea.sflag [#allocation4], %s245_s12 }
 0x117   : > { %849 = vmatpush.msrb.mxu3 %v1574_v24 }
 0x119   : > { %850 = vmatpush.msrb.mxu3 %v1584_v27 }
 0x11b   : > { %851 = vmatpush.msrb.mxu3 %v1593_v30 }
 0x11d   : > { %852 = vmatpush.msrb.mxu3 %v1603_v33 }
 0x11f   : > { %853 = vmatpush.msrb.mxu3 %v1612_v36 }
 0x121   : > { %854 = vmatpush.msrb.mxu3 %v1621_v39 }
 0x123   : > { %855 = vmatpush.msrb.mxu3 %v1635_v42 }
 0x125   : > { %856 = vmatpush.msrb.mxu3 %v1644_v45 }
 0x127   : > { %857 = vmatpush.msrb.mxu3 %v1652_v48 }
 0x128   : > { %858 = vmatmul.f32.vlgmr.msrb.gmra.mxu3 %v1810_v21 }
 0x13d   : > { %v325_v59 = vpop.f32.mrf.mxu0 }
 0x13e   : > { %v328_v60 = vadd.f32 %v325_v59, %v1724_v58 }
 0x147   : > { %v389_v57 = vpop.f32.mrf.mxu3 }
 0x148   : > { %v392_v61 = vadd.f32 %v389_v57, %v328_v60 }
 0x14f   : > { %v453_v62 = vpop.f32.mrf.mxu3 }
 0x150   : > { %v456_v63 = vadd.f32 %v453_v62, %v392_v61 }
 0x152   : > { %v457_v46 = vmax.f32 %v456_v63, 0.0 }
 0x154   : > { %458 = vst [vmem:[%s1736_s14] sm:$0xff] %v457_v46 }
 0x169   : > { %v493_v53 = vpop.f32.mrf.mxu3 }
 0x16a   : > { %1143 = vmatpush.msk.msra.mxu0 %vm304_vm0, %v493_v53 }
 0x16b   : > { %1144 = vmatmul.msk.f32.vlgmr.msra.gmra.mxu0 %vm300_vm1, %v1677_v49 }
 0x16c   : > { %596 = vmatpush.msrb.mxu0 %v1511_v2 }
 0x16e   : > { %597 = vmatpush.msrb.mxu0 %v1516_v4 }
 0x170   : > { %598 = vmatpush.msrb.mxu0 %v1522_v6 }
 0x171   : > { %v576_v7 = vpop.f32.mrf.mxu3 }
 0x172   : > { %599 = vmatpush.msrb.mxu0 %v1533_v10 }
 0x174   : > { %600 = vmatpush.msrb.mxu0 %v1542_v13 }
 0x176   : > { %601 = vmatpush.msrb.mxu0 %v1551_v16 }
 0x178   : > { %602 = vmatpush.msrb.mxu0 %v1560_v19 }
 0x17a   : > { %603 = vmatpush.msrb.mxu0 %v1569_v22 }
 0x17c   : > { %604 = vmatpush.msrb.mxu0 %v1578_v25 }
 0x17e   : > { %605 = vmatpush.msrb.mxu0 %v1588_v28 }
 0x180   : > { %606 = vmatpush.msrb.mxu0 %v1597_v31 }
 0x182   : > { %607 = vmatpush.msrb.mxu0 %v1607_v34 }
 0x184   : > { %608 = vmatpush.msrb.mxu0 %v1616_v37 }
 0x186   : > { %609 = vmatpush.msrb.mxu0 %v1625_v40 }
 0x188   : > { %610 = vmatpush.msrb.mxu0 %v1639_v43 }
 0x18a   : > { %611 = vmatpush.msrb.mxu0 %v1649_v47 }
 0x18b   : > { %612 = vmatmul.f32.vlgmr.msrb.gmra.mxu0 %v1681_v51  ;;  %v676_v18 = vpop.f32.mrf.mxu3 }
 0x18c   : > { %779 = vmatpush.msra.mxu0 %v1511_v2 }
 0x18e   : > { %780 = vmatpush.msra.mxu0 %v1516_v4 }
 0x190   : > { %781 = vmatpush.msra.mxu0 %v1522_v6 }
 0x192   : > { %782 = vmatpush.msra.mxu0 %v1533_v10 }
 0x194   : > { %783 = vmatpush.msra.mxu0 %v1542_v13 }
 0x196   : > { %784 = vmatpush.msra.mxu0 %v1551_v16 }
 0x198   : > { %785 = vmatpush.msra.mxu0 %v1560_v19 }
 0x19a   : > { %786 = vmatpush.msra.mxu0 %v1569_v22 }
 0x19c   : > { %787 = vmatpush.msra.mxu0 %v1578_v25 }
 0x19e   : > { %788 = vmatpush.msra.mxu0 %v1588_v28 }
 0x1a0   : > { %789 = vmatpush.msra.mxu0 %v1597_v31 }
 0x1a2   : > { %790 = vmatpush.msra.mxu0 %v1607_v34 }
 0x1a4   : > { %791 = vmatpush.msra.mxu0 %v1616_v37 }
 0x1a6   : > { %792 = vmatpush.msra.mxu0 %v1625_v40 }
 0x1a8   : > { %793 = vmatpush.msra.mxu0 %v1639_v43 }
 0x1aa   : > { %794 = vmatpush.msra.mxu0 %v1649_v47 }
 0x1ab   : > { %795 = vmatmul.f32.vlgmr.msra.gmra.mxu0 %v1748_v50  ;;  %v859_v42 = vpop.f32.mrf.mxu3 }
 0x1e8   : > { %v516_v5 = vpop.f32.mrf.mxu0 }
 0x1e9   : > { %v519_v9 = vadd.f32 %v516_v5, %v1724_v58 }
 0x1eb   : > { %v579_v12 = vadd.f32 %v576_v7, %v519_v9 }
 0x208   : > { %v613_v15 = vpop.f32.mrf.mxu0 }
 0x209   : > { %1147 = vmatpush.msk.msrb.mxu1 %vm304_vm0, %v613_v15 }
 0x20a   : > { %1148 = vmatmul.msk.f32.vlgmr.msrb.gmra.mxu1 %vm300_vm1, %v1701_v55 }
 0x20b   : > { %1149 = vmatpush.msk.msra.mxu1 %vm304_vm0, %v676_v18 }
 0x20d   : > { %719 = vmatpush.msrb.mxu1 %v1506_v0 }
 0x20f   : > { %720 = vmatpush.msrb.mxu1 %v1508_v1 }
 0x211   : > { %721 = vmatpush.msrb.mxu1 %v1513_v3 }
 0x212   : > { %1150 = vmatmul.msk.f32.vlgmr.msra.gmra.mxu1 %vm300_vm1, %v1677_v49 }
 0x213   : > { %722 = vmatpush.msrb.mxu1 %v1526_v8 }
 0x215   : > { %723 = vmatpush.msrb.mxu1 %v1535_v11 }
 0x217   : > { %724 = vmatpush.msrb.mxu1 %v1544_v14 }
 0x219   : > { %725 = vmatpush.msrb.mxu1 %v1553_v17 }
 0x21b   : > { %726 = vmatpush.msrb.mxu1 %v1562_v20 }
 0x21d   : > { %727 = vmatpush.msrb.mxu1 %v1571_v23 }
 0x21f   : > { %728 = vmatpush.msrb.mxu1 %v1581_v26 }
 0x221   : > { %729 = vmatpush.msrb.mxu1 %v1590_v29 }
 0x223   : > { %730 = vmatpush.msrb.mxu1 %v1600_v32 }
 0x225   : > { %731 = vmatpush.msrb.mxu1 %v1609_v35 }
 0x227   : > { %732 = vmatpush.msrb.mxu1 %v1618_v38 }
 0x228   : > { %v796_v39 = vpop.f32.mrf.mxu0 }
 0x229   : > { %733 = vmatpush.msrb.mxu1 %v1627_v41 }
 0x22b   : > { %734 = vmatpush.msrb.mxu1 %v1641_v44 }
 0x22c   : > { %735 = vmatmul.f32.vlgmr.msrb.gmra.mxu1 %v1748_v50 }
 0x287   : > { %v636_v24 = vpop.f32.mrf.mxu1 }
 0x288   : > { %v639_v27 = vadd.f32 %v636_v24, %v579_v12 }
 0x28a   : > { %v640_v30 = vmax.f32 %v639_v27, 0.0 }
 0x28c   : > { %641 = vst [vmem:[%s1736_s14 + $0x8] sm:$0xff] %v640_v30 }
 0x28f   : > { %v699_v33 = vpop.f32.mrf.mxu1 }
 0x2a9   : > { %v736_v36 = vpop.f32.mrf.mxu1 }
 0x2aa   : > { %1151 = vmatpush.msk.msra.mxu2 %vm304_vm0, %v736_v36 }
 0x2ab   : > { %1152 = vmatmul.msk.f32.vlgmr.msra.gmra.mxu2 %vm300_vm1, %v1689_v52 }
 0x2ac   : > { %1153 = vmatpush.msk.msrb.mxu2 %vm304_vm0, %v796_v39 }
 0x2ae   : > { %1155 = vmatpush.msk.msra.mxu2 %vm304_vm0, %v859_v42 }
 0x2b3   : > { %1154 = vmatmul.msk.f32.vlgmr.msrb.gmra.mxu2 %vm300_vm1, %v1701_v55 }
 0x2b4   : > { %902 = vmatpush.msrb.mxu2 %v1506_v0 }
 0x2b6   : > { %903 = vmatpush.msrb.mxu2 %v1508_v1  ;;  %v702_v1 = vadd.f32 %v699_v33, %v1724_v58 }
 0x2b8   : > { %904 = vmatpush.msrb.mxu2 %v1513_v3 }
 0x2ba   : > { %905 = vmatpush.msrb.mxu2 %v1526_v8 }
 0x2bb   : > { %1156 = vmatmul.msk.f32.vlgmr.msra.gmra.mxu2 %vm300_vm1, %v1677_v49 }
 0x2bc   : > { %906 = vmatpush.msrb.mxu2 %v1535_v11 }
 0x2be   : > { %907 = vmatpush.msrb.mxu2 %v1544_v14 }
 0x2c0   : > { %908 = vmatpush.msrb.mxu2 %v1553_v17 }
 0x2c2   : > { %909 = vmatpush.msrb.mxu2 %v1562_v20 }
 0x2c4   : > { %910 = vmatpush.msrb.mxu2 %v1571_v23 }
 0x2c6   : > { %911 = vmatpush.msrb.mxu2 %v1581_v26 }
 0x2c8   : > { %912 = vmatpush.msrb.mxu2 %v1590_v29 }
 0x2ca   : > { %913 = vmatpush.msrb.mxu2 %v1600_v32 }
 0x2cc   : > { %914 = vmatpush.msrb.mxu2 %v1609_v35 }
 0x2ce   : > { %915 = vmatpush.msrb.mxu2 %v1618_v38 }
 0x2d0   : > { %916 = vmatpush.msrb.mxu2 %v1627_v41 }
 0x2d2   : > { %917 = vmatpush.msrb.mxu2 %v1641_v44 }
 0x2d3   : > { %918 = vmatmul.f32.vlgmr.msrb.gmra.mxu2 %v1810_v21 }
 0x32e   : > { %v759_v0 = vpop.f32.mrf.mxu2 }
 0x32f   : > { %v762_v3 = vadd.f32 %v759_v0, %v702_v1 }
 0x336   : > { %v819_v8 = vpop.f32.mrf.mxu2 }
 0x337   : > { %v822_v11 = vadd.f32 %v819_v8, %v762_v3 }
 0x339   : > { %v823_v14 = vmax.f32 %v822_v11, 0.0 }
 0x33b   : > { %824 = vst [vmem:[%s1736_s14 + $0x10] sm:$0xff] %v823_v14 }
 0x33e   : > { %v882_v17 = vpop.f32.mrf.mxu2 }
 0x356   : > { %v919_v20 = vpop.f32.mrf.mxu2 }
 0x357   : > { %1157 = vmatpush.msk.msra.mxu1 %vm304_vm0, %v919_v20 }
 0x358   : > { %1158 = vmatmul.msk.f32.vlgmr.msra.gmra.mxu1 %vm300_vm1, %v1689_v52 }
 0x359   : > { %962 = vmatpush.msrb.mxu1 %v1511_v2  ;;  %v885_v2 = vadd.f32 %v882_v17, %v1724_v58 }
 0x35b   : > { %963 = vmatpush.msrb.mxu1 %v1516_v4 }
 0x35d   : > { %964 = vmatpush.msrb.mxu1 %v1522_v6 }
 0x35f   : > { %965 = vmatpush.msrb.mxu1 %v1533_v10 }
 0x361   : > { %966 = vmatpush.msrb.mxu1 %v1542_v13 }
 0x363   : > { %967 = vmatpush.msrb.mxu1 %v1551_v16 }
 0x365   : > { %968 = vmatpush.msrb.mxu1 %v1560_v19 }
 0x367   : > { %969 = vmatpush.msrb.mxu1 %v1569_v22 }
 0x369   : > { %970 = vmatpush.msrb.mxu1 %v1578_v25 }
 0x36b   : > { %971 = vmatpush.msrb.mxu1 %v1588_v28 }
 0x36d   : > { %972 = vmatpush.msrb.mxu1 %v1597_v31 }
 0x36f   : > { %973 = vmatpush.msrb.mxu1 %v1607_v34 }
 0x371   : > { %974 = vmatpush.msrb.mxu1 %v1616_v37 }
 0x373   : > { %975 = vmatpush.msrb.mxu1 %v1625_v40 }
 0x375   : > { %976 = vmatpush.msrb.mxu1 %v1639_v43 }
 0x377   : > { %977 = vmatpush.msrb.mxu1 %v1649_v47 }
 0x378   : > { %978 = vmatmul.f32.vlgmr.msrb.gmra.mxu1 %v1810_v21 }
 0x3d5   : > { %v942_v4 = vpop.f32.mrf.mxu1 }
 0x3d6   : > { %v945_v6 = vadd.f32 %v942_v4, %v885_v2 }
 0x3f5   : > { %v979_v10 = vpop.f32.mrf.mxu1 }
 0x3f6   : > { %1159 = vmatpush.msk.msrb.mxu0 %vm304_vm0, %v979_v10 }
 0x3f7   : > { %1160 = vmatmul.msk.f32.vlgmr.msrb.gmra.mxu0 %vm300_vm1, %v1701_v55 }
 0x474   : > { %v1002_v13 = vpop.f32.mrf.mxu0 }
 0x475   : > { %v1005_v16 = vadd.f32 %v1002_v13, %v945_v6 }
 0x477   : > { %v1006_v19 = vmax.f32 %v1005_v16, 0.0 }
 0x479   : > { %1007 = vst [vmem:[%s1736_s14 + $0x18] sm:$0xff] %v1006_v19 }
 0x47a   : > { %1333 = shalt.err (!%p1330_p9)
}
 0x47b   : > { %1176 = dma.vmem_to_hbm [thread:$0]  (%p1463_p4), %s1025_s29, 512, %s1027_s30, %s1009_s5  }
 0x47c PF: > { %p1193_p10 = scmp.ge.s32.totalorder %s1392_s20, 2  ;;  %s1038_s12 = sand.u32 1, %s1372_s15  }
 0x47d   : > { %s1039_s13 = scalar_lea.sflag [#allocation4], %s1038_s12 }
 0x47e   : > { %p1186_p11 = pnand %p1193_p10, %p1470_p8 }
 0x480   : > { %p1187_p12 = pneg %p1186_p11 }
 0x482   : > { %1367 = dma.done.wait (%p1187_p12), %s1039_s13, 512  }
 0x483   : > { %1369 = vsyncadd (%p1187_p12), %s1039_s13, 4294966784  ;;  %s19_s20 = sadd.s32 1, %s1392_s20   ;;  %s1934_s15 = smov %s1376_s16 }
 0x484   : > { %p16_p13 = scmp.ge.s32.totalorder %s19_s20, 4   ;;  %s1935_s16 = smov %s1380_s17 }
 0x485   : > { %s1936_s17 = smov %s1476_s28  ;;  %s1937_s18 = smov %s1388_s19 }
 0x486   : > { %s1938_s19 = smov %s1940_s23  ;;  %18 = sbr.rel (!%p16_p13) target bundleno = 6 (0x6), region = 82 }
 0x48b   :  { %1045 = vsyncpa [#allocation3], 1 }
 0x48c   :  { %1047 = vsyncpa [#allocation3 + $0x1], 1 }
 0x48d   :  { %1048 = vsyncpa [#allocation6], 1 }
 0x48e   :  { %1049 = vsyncpa [#allocation4], 1 }
 0x48f   :  { %1051 = vsyncpa [#allocation4 + $0x1], 1 }

</bundles_post_ra>
